<compile_context>
chip_gen: v7x
topology: tpu7x:2x2x1
jax: 0.10.0
libtpu: 0.0.40
codegen_flags: <defaults>
</compile_context>

<pallas_src>
import jax
import jax.numpy as jnp
from jax.experimental import pallas as pl
from jax.experimental.pallas import tpu as pltpu

G = 12                    # batch rows packed per lane group (12 * 10 = 120 of 128 lanes)
IN_F = 10
OUT_F = 5
PACKED_IN = G * IN_F      # 120
PACKED_OUT = G * OUT_F    # 60

_ROW_ALIGN = 16           # packed-row tile alignment (safe for f32 and bf16 tiling)
_MAX_TILE_ROWS = 4096     # ~1.9 MiB x-tile / step; double-buffered set fits v5e's 16 MiB
_MIN_ROWS_FOR_SPLIT = 512 # only force >=2 grid steps (v7x megacore) for big batches


def _round_up(a, m):
    return ((a + m - 1) // m) * m


def toy_model_kernel(x_ref, w1_ref, b1_ref, w2_ref, b2_ref, o_ref):
    # Two lane-dense MXU matmuls in bf16 with f32 accumulation; biases + ReLU in f32.
    x = x_ref[...].astype(jnp.bfloat16)                                # (tb, 120)
    h = jnp.dot(x, w1_ref[...], preferred_element_type=jnp.float32)    # (tb, 120) f32
    h = jnp.maximum(h + b1_ref[...], 0.0)                              # bias + ReLU (f32)
    y = jnp.dot(h.astype(jnp.bfloat16), w2_ref[...],
                preferred_element_type=jnp.float32)                    # (tb, 60) f32
    o_ref[...] = (y + b2_ref[...]).astype(o_ref.dtype)


def pack_params(w1, b1, w2, b2):
    """One-time parameter prep (hoisted out of the forward path).

    w1: (10,10) = net1.weight.T, b1: (1,10), w2: (10,5) = net2.weight.T, b2: (1,5).
    Returns block-diagonal bf16 weights and tiled f32 biases for the packed layout.
    """
    eye = jnp.eye(G, dtype=jnp.float32)
    w1_bd = jnp.kron(eye, w1.astype(jnp.float32)).astype(jnp.bfloat16)   # (120, 120)
    w2_bd = jnp.kron(eye, w2.astype(jnp.float32)).astype(jnp.bfloat16)   # (120, 60)
    b1_p = jnp.tile(b1.reshape(1, IN_F).astype(jnp.float32), (1, G))     # (1, 120)
    b2_p = jnp.tile(b2.reshape(1, OUT_F).astype(jnp.float32), (1, G))    # (1, 60)
    return w1_bd, b1_p, w2_bd, b2_p


def toy_model_forward(x, packed_params):
    """x: (B, 10) f32. packed_params from pack_params(). Returns (B, 5) f32."""
    w1_bd, b1_p, w2_bd, b2_p = packed_params
    B = x.shape[0]

    # ---- tile selection: big tiles, minimal padding, >=2 steps for large batches ----
    rows = pl.cdiv(B, G)                             # packed rows needed
    rows_aligned = _round_up(max(rows, 1), _ROW_ALIGN)
    n_steps = pl.cdiv(rows_aligned, _MAX_TILE_ROWS)
    if rows_aligned >= _MIN_ROWS_FOR_SPLIT:
        n_steps = max(n_steps, 2)                    # let v7x shard across both TCs
    tb = _round_up(pl.cdiv(rows_aligned, n_steps), _ROW_ALIGN)
    rows_pad = n_steps * tb
    B_pad = rows_pad * G

    # Pad only when strictly needed (tiny for aligned batches), then pack 12 rows/lane-row.
    if B_pad != B:
        x = jnp.pad(x, ((0, B_pad - B), (0, 0)))
    x_p = x.reshape(rows_pad, PACKED_IN)

    flops = 2 * rows_pad * (PACKED_IN * PACKED_IN + PACKED_IN * PACKED_OUT)
    bytes_accessed = (rows_pad * PACKED_IN * 4 + rows_pad * PACKED_OUT * 4
                      + w1_bd.size * 2 + w2_bd.size * 2 + b1_p.size * 4 + b2_p.size * 4)

    out = pl.pallas_call(
        toy_model_kernel,
        out_shape=jax.ShapeDtypeStruct((rows_pad, PACKED_OUT), jnp.float32),
        grid_spec=pltpu.PrefetchScalarGridSpec(
            num_scalar_prefetch=0,
            grid=(n_steps,),
            in_specs=[
                pl.BlockSpec((tb, PACKED_IN), lambda i: (i, 0)),   # streamed x tiles
                pl.BlockSpec(w1_bd.shape, lambda i: (0, 0)),       # weights stay VMEM-resident
                pl.BlockSpec(b1_p.shape, lambda i: (0, 0)),
                pl.BlockSpec(w2_bd.shape, lambda i: (0, 0)),
                pl.BlockSpec(b2_p.shape, lambda i: (0, 0)),
            ],
            out_specs=pl.BlockSpec((tb, PACKED_OUT), lambda i: (i, 0)),
        ),
        compiler_params=pltpu.CompilerParams(
            dimension_semantics=("parallel",),   # shard batch tiles across TCs on v7x
        ),
        cost_estimate=pl.CostEstimate(
            flops=flops, transcendentals=0, bytes_accessed=bytes_accessed),
    )(x_p, w1_bd, b1_p, w2_bd, b2_p)

    # Unpack (rows_pad, 60) -> (B_pad, 5) and drop pad rows (free reshape + slice).
    return out.reshape(B_pad, OUT_F)[:B]


def init_params(key):
    """Deterministic init mimicking PyTorch nn.Linear default (uniform +/- 1/sqrt(fan_in))."""
    k1, k2, k3, k4 = jax.random.split(key, 4)
    bound = 1.0 / jnp.sqrt(10.0)
    # Stored already transposed: (in_features, out_features)
    w1 = jax.random.uniform(k1, (IN_F, IN_F), jnp.float32, -bound, bound)
    b1 = jax.random.uniform(k2, (1, IN_F), jnp.float32, -bound, bound)
    w2 = jax.random.uniform(k3, (IN_F, OUT_F), jnp.float32, -bound, bound)
    b2 = jax.random.uniform(k4, (1, OUT_F), jnp.float32, -bound, bound)
    return w1, b1, w2, b2


if __name__ == "__main__":
    key = jax.random.PRNGKey(0)
    kx, kp = jax.random.split(key)

    B = 8
    x = jax.random.normal(kx, (B, IN_F), dtype=jnp.float32)
    w1, b1, w2, b2 = init_params(kp)

    packed = pack_params(w1, b1, w2, b2)   # one-time param prep (kron hoisted out of forward)
    out = jax.jit(toy_model_forward)(x, packed)
    out = jax.block_until_ready(out)

    # Reference check in plain JAX (f32); tolerance loosened for bf16 matmuls.
    ref = jnp.maximum(x @ w1 + b1, 0.0) @ w2 + b2
    assert out.shape == (B, OUT_F)
    assert jnp.allclose(out, ref, atol=5e-2, rtol=5e-2), float(jnp.max(jnp.abs(out - ref)))

    print("KERNEL_OK")
</pallas_src>

<mosaic_0001>
module attributes {stable_mosaic.version = 11 : i64} {
  func.func @toy_model_kernel(%arg0: i32, %arg1: memref<16x120xf32, #tpu.memory_space<vmem>>, %arg2: memref<120x120xbf16, #tpu.memory_space<vmem>>, %arg3: memref<1x120xf32, #tpu.memory_space<vmem>>, %arg4: memref<120x60xbf16, #tpu.memory_space<vmem>>, %arg5: memref<1x60xf32, #tpu.memory_space<vmem>>, %arg6: memref<16x60xf32, #tpu.memory_space<vmem>>) attributes {dimension_semantics = [#tpu.dimension_semantics<parallel>], iteration_bounds = array<i64: 1>, scalar_prefetch = 0 : i64, scratch_operands = 0 : i64, tpu.core_type = #tpu.core_type<tc>, window_params = [{transform_indices = @transform_0, window_bounds = array<i64: 16, 120>}, {pipeline_mode = #tpu.pipeline_mode<synchronous>, transform_indices = @transform_1, window_bounds = array<i64: 120, 120>}, {pipeline_mode = #tpu.pipeline_mode<synchronous>, transform_indices = @transform_2, window_bounds = array<i64: 1, 120>}, {pipeline_mode = #tpu.pipeline_mode<synchronous>, transform_indices = @transform_3, window_bounds = array<i64: 120, 60>}, {pipeline_mode = #tpu.pipeline_mode<synchronous>, transform_indices = @transform_4, window_bounds = array<i64: 1, 60>}, {transform_indices = @transform_5, window_bounds = array<i64: 16, 60>}]} {
    %c0 = arith.constant 0 : index
    %c0_0 = arith.constant 0 : index
    %0 = vector.load %arg1[%c0, %c0_0] : memref<16x120xf32, #tpu.memory_space<vmem>>, vector<16x120xf32>
    %1 = arith.truncf %0 : vector<16x120xf32> to vector<16x120xbf16>
    %c0_1 = arith.constant 0 : index
    %c0_2 = arith.constant 0 : index
    %2 = vector.load %arg2[%c0_1, %c0_2] : memref<120x120xbf16, #tpu.memory_space<vmem>>, vector<120x120xbf16>
    %cst = arith.constant dense<0.000000e+00> : vector<16x120xf32>
    %3 = tpu.matmul %1, %2, %cst {dimension_numbers = #tpu.dot_dimension_numbers<[1], [0], [0], [1], [0, 0, 1, 1], [], []>} : vector<16x120xbf16>, vector<120x120xbf16>, vector<16x120xf32> -> vector<16x120xf32>
    %c0_3 = arith.constant 0 : index
    %c0_4 = arith.constant 0 : index
    %4 = vector.load %arg3[%c0_3, %c0_4] : memref<1x120xf32, #tpu.memory_space<vmem>>, vector<1x120xf32>
    %5 = vector.broadcast %4 : vector<1x120xf32> to vector<16x120xf32>
    %6 = arith.addf %3, %5 : vector<16x120xf32>
    %cst_5 = arith.constant 0.000000e+00 : f32
    %7 = vector.broadcast %cst_5 : f32 to vector<16x120xf32>
    %8 = arith.maximumf %6, %7 : vector<16x120xf32>
    %9 = arith.truncf %8 : vector<16x120xf32> to vector<16x120xbf16>
    %c0_6 = arith.constant 0 : index
    %c0_7 = arith.constant 0 : index
    %10 = vector.load %arg4[%c0_6, %c0_7] : memref<120x60xbf16, #tpu.memory_space<vmem>>, vector<120x60xbf16>
    %cst_8 = arith.constant dense<0.000000e+00> : vector<16x60xf32>
    %11 = tpu.matmul %9, %10, %cst_8 {dimension_numbers = #tpu.dot_dimension_numbers<[1], [0], [0], [1], [0, 0, 1, 1], [], []>} : vector<16x120xbf16>, vector<120x60xbf16>, vector<16x60xf32> -> vector<16x60xf32>
    %c0_9 = arith.constant 0 : index
    %c0_10 = arith.constant 0 : index
    %12 = vector.load %arg5[%c0_9, %c0_10] : memref<1x60xf32, #tpu.memory_space<vmem>>, vector<1x60xf32>
    %13 = vector.broadcast %12 : vector<1x60xf32> to vector<16x60xf32>
    %14 = arith.addf %11, %13 : vector<16x60xf32>
    %c0_11 = arith.constant 0 : index
    %c0_12 = arith.constant 0 : index
    %15 = vector.load %arg6[%c0_11, %c0_12] : memref<16x60xf32, #tpu.memory_space<vmem>>, vector<16x60xf32>
    tpu.vector_store %arg6[%c0_11, %c0_12], %14 {strides = array<i32>} : memref<16x60xf32, #tpu.memory_space<vmem>>, vector<16x60xf32>,
    return
  }
  func.func @transform_0(%arg0: i32) -> (i32, i32) {
    %c0_i32 = arith.constant 0 : i32
    %c0_i32_0 = arith.constant 0 : i32
    return %arg0, %c0_i32 : i32, i32
  }
  func.func @transform_1(%arg0: i32) -> (i32, i32) {
    %c0_i32 = arith.constant 0 : i32
    %c0_i32_0 = arith.constant 0 : i32
    %c0_i32_1 = arith.constant 0 : i32
    return %c0_i32, %c0_i32_0 : i32, i32
  }
  func.func @transform_2(%arg0: i32) -> (i32, i32) {
    %c0_i32 = arith.constant 0 : i32
    %c0_i32_0 = arith.constant 0 : i32
    %c0_i32_1 = arith.constant 0 : i32
    return %c0_i32, %c0_i32_0 : i32, i32
  }
  func.func @transform_3(%arg0: i32) -> (i32, i32) {
    %c0_i32 = arith.constant 0 : i32
    %c0_i32_0 = arith.constant 0 : i32
    %c0_i32_1 = arith.constant 0 : i32
    return %c0_i32, %c0_i32_0 : i32, i32
  }
  func.func @transform_4(%arg0: i32) -> (i32, i32) {
    %c0_i32 = arith.constant 0 : i32
    %c0_i32_0 = arith.constant 0 : i32
    %c0_i32_1 = arith.constant 0 : i32
    return %c0_i32, %c0_i32_0 : i32, i32
  }
  func.func @transform_5(%arg0: i32) -> (i32, i32) {
    %c0_i32 = arith.constant 0 : i32
    %c0_i32_0 = arith.constant 0 : i32
    return %arg0, %c0_i32 : i32, i32
  }
}

</mosaic_0001>

<bundles_post_ra>
// kernel: toy_model_forward.1
= control target key start
LH: loop header
LB: loop body
LE: loop exit
PB: predicated region body
PF: predicated region fallthrough
CT: control target
= control target key end

     0   :  { %v360_v0 = vmov 0.0   ;;  %vm361_vm0 = vmmov 0   ;;  %vm95_vm1 = vcmask 1043456   ;;  %vm91_vm2 = vcmask 982016   ;;  %s462_s1 = inlined_call_operand.vmem [shape: bf16[120,120], index: 1, kind: input, shape index: {}]   ;;  %s463_s3 = inlined_call_operand.vmem [shape: bf16[120,60], index: 3, kind: input, shape index: {}]   ;;  %s464_s0 = inlined_call_operand.vmem [shape: f32[16,120], index: 0, kind: input, shape index: {}]   ;;  %s465_s2 = inlined_call_operand.vmem [shape: f32[1,120], index: 2, kind: input, shape index: {}]   ;;  %s466_s4 = inlined_call_operand.vmem [shape: f32[1,60], index: 4, kind: input, shape index: {}]   ;;  %s467_s5 = inlined_call_operand.vmem [shape: f32[16,60], index: 5, kind: output, shape index: {}]  }
   0x1   :  { %302 = vmatprep.subr.bf16.mxu0 %v360_v0  ;;  %v344_v1 = vld [vmem:[%s462_s1] sm:$0xff]   ;;  %318 = vmatprep.mubr.msk.bf16.mxu0 %vm361_vm0, %v360_v0  ;;  %v345_v2 = vld [vmem:[%s462_s1 + $0x8] sm:$0xff]   ;;  %v346_v3 = vld [vmem:[%s462_s1 + $0x10] sm:$0xff]   ;;  %vm257_vm3 = vcmask 490496  }
   0x2   :  { %322 = vmatprep.subr.bf16.mxu1 %v360_v0  ;;  %338 = vmatprep.mubr.msk.bf16.mxu1 %vm361_vm0, %v360_v0  ;;  %v352_v4 = vld [vmem:[%s463_s3] sm:$0xff]   ;;  %v347_v5 = vld [vmem:[%s462_s1 + $0x18] sm:$0xff]   ;;  %v353_v6 = vld [vmem:[%s463_s3 + $0x8] sm:$0xff]  }
   0x3   :  { %303 = vmatpush3.bf16.msra.mxu0 %v344_v1  ;;  %323 = vmatpush3.bf16.msra.mxu1 %v352_v4  ;;  %v348_v7 = vld [vmem:[%s462_s1 + $0x20] sm:$0xff]   ;;  %v354_v8 = vld [vmem:[%s463_s3 + $0x10] sm:$0xff]   ;;  %v349_v9 = vld [vmem:[%s462_s1 + $0x28] sm:$0xff]  }
   0x4   :  { %304 = vmatprep.subr.bf16.mxu0 %v360_v0  ;;  %324 = vmatprep.subr.bf16.mxu1 %v360_v0  ;;  %v355_v10 = vld [vmem:[%s463_s3 + $0x18] sm:$0xff]   ;;  %v350_v11 = vld [vmem:[%s462_s1 + $0x30] sm:$0xff]   ;;  %v356_v13 = vld [vmem:[%s463_s3 + $0x20] sm:$0xff]  }
   0x5   :  { %v351_v12 = vld [vmem:[%s462_s1 + $0x38] ss:$0 sps:$4 sm:$0xff]   ;;  %v21_v14 = vld [vmem:[%s464_s0] sm:$0xff]  ;;  %v22_v15 = vld [vmem:[%s464_s0 + $0x8] sm:$0xff] }
   0x6   :  { %v97_v16 = vsel %vm95_vm1, %v351_v12, 0  ;;  %v357_v17 = vld [vmem:[%s463_s3 + $0x28] sm:$0xff]   ;;  %v23_v18 = vpack.c.bf16 %v22_v15, %v21_v14  ;;  %v358_v19 = vld [vmem:[%s463_s3 + $0x30] sm:$0xff]   ;;  %v359_v20 = vld [vmem:[%s463_s3 + $0x38] ss:$0 sps:$4 sm:$0xff]  }
   0x7   :  { %305 = vmatpush3.bf16.msra.mxu0 %v345_v2  ;;  %325 = vmatpush3.bf16.msra.mxu1 %v353_v6  ;;  %v214_v21 = vsel %vm95_vm1, %v359_v20, 0  ;;  %v264_v22 = vld [vmem:[%s465_s2] ss:$0 sm:$0xff] }
   0x8   :  { %306 = vmatprep.subr.bf16.mxu0 %v360_v0  ;;  %326 = vmatprep.subr.bf16.mxu1 %v360_v0  ;;  %v274_v32 = vld [vmem:[%s466_s4] ss:$0 sm:$0xff] }
   0xb   :  { %307 = vmatpush3.bf16.msra.mxu0 %v346_v3  ;;  %327 = vmatpush3.bf16.msra.mxu1 %v354_v8 }
   0xc   :  { %308 = vmatprep.subr.bf16.mxu0 %v360_v0  ;;  %328 = vmatprep.subr.bf16.mxu1 %v360_v0 }
   0xf   :  { %309 = vmatpush3.bf16.msra.mxu0 %v347_v5  ;;  %329 = vmatpush3.bf16.msra.mxu1 %v355_v10 }
  0x10   :  { %310 = vmatprep.subr.bf16.mxu0 %v360_v0  ;;  %330 = vmatprep.subr.bf16.mxu1 %v360_v0 }
  0x13   :  { %311 = vmatpush3.bf16.msra.mxu0 %v348_v7  ;;  %331 = vmatpush3.bf16.msra.mxu1 %v356_v13 }
  0x14   :  { %312 = vmatprep.subr.bf16.mxu0 %v360_v0  ;;  %332 = vmatprep.subr.bf16.mxu1 %v360_v0 }
  0x17   :  { %313 = vmatpush3.bf16.msra.mxu0 %v349_v9  ;;  %333 = vmatpush3.bf16.msra.mxu1 %v357_v17 }
  0x18   :  { %314 = vmatprep.subr.bf16.mxu0 %v360_v0  ;;  %334 = vmatprep.subr.bf16.mxu1 %v360_v0 }
  0x1b   :  { %315 = vmatpush3.bf16.msra.mxu0 %v350_v11  ;;  %335 = vmatpush3.bf16.msra.mxu1 %v358_v19 }
  0x1c   :  { %316 = vmatprep.subr.bf16.mxu0 %v360_v0  ;;  %336 = vmatprep.subr.bf16.mxu1 %v360_v0 }
  0x1f   :  { %317 = vmatpush3.bf16.msra.mxu0 %v97_v16  ;;  %337 = vmatpush3.bf16.msra.mxu1 %v214_v21 }
  0x22   :  { %319 = vmatmul.mubr.msk.bf16.vlgmr.msra.gmra.mrb[0].mxu0 %vm91_vm2, %v23_v18 }
  0xf5   :  { %v133_v23 = vpop.f32.mrb[0].mxu0 }
  0xf6   :  { %v134_v24 = vadd.f32 %v264_v22, %v133_v23  ;;  %v320_v25 = vpop.f32.mrb[1].mxu0 }
  0xf7   :  { %v136_v26 = vpop.f32.mrb[2].mxu0 }
  0xf8   :  { %v137_v27 = vadd.f32 %v264_v22, %v136_v26  ;;  %v321_v28 = vpop.f32.mrb[3].mxu0  ;;  %v140_v29 = vmax.f32 %v134_v24, 0.0 }
  0xfa   :  { %v141_v30 = vmax.f32 %v137_v27, 0.0 }
  0xfc   :  { %v142_v31 = vpack.c.bf16 %v141_v30, %v140_v29 }
  0xfe   :  { %339 = vmatmul.mubr.msk.bf16.vlgmr.msra.gmra.mrb[0].mxu1 %vm91_vm2, %v142_v31 }
 0x1d1   :  { %v250_v33 = vpop.f32.mrb[0].mxu1 }
 0x1d2   :  { %v251_v34 = vadd.f32 %v274_v32, %v250_v33  ;;  %v340_v35 = vpop.f32.mrb[1].mxu1 }
 0x1d3   :  { %v253_v36 = vpop.f32.mrb[2].mxu1 }
 0x1d4   :  { %258 = vst.msk [vmem:[%s467_s5] sm:$0xff] %vm257_vm3, %v251_v34  ;;  %v254_v37 = vadd.f32 %v274_v32, %v253_v36  ;;  %v341_v38 = vpop.f32.mrb[3].mxu1 }
 0x1d6   :  { %259 = vst.msk [vmem:[%s467_s5 + $0x8] sm:$0xff] %vm257_vm3, %v254_v37 }

</bundles_post_ra>
